<compile_context>
chip_gen: v6e
topology: v6e:2x2x1
jax: 0.10.0
libtpu: 0.0.40
codegen_flags: <defaults>
</compile_context>

<pallas_src>
import functools
import math

import jax
import jax.numpy as jnp
import numpy as np
from jax.experimental import pallas as pl
from jax.experimental.pallas import tpu as pltpu


def _round_up(x: int, m: int) -> int:
    return (x + m - 1) // m * m


def _pad_to(x, shape, dtype):
    """Zero-pad `x` into `shape` and cast to `dtype` (no-op if already there)."""
    if tuple(x.shape) == tuple(shape) and x.dtype == jnp.dtype(dtype):
        return x
    out = jnp.zeros(shape, dtype)
    return out.at[tuple(slice(0, s) for s in x.shape)].set(x.astype(dtype))


# ---------------------------------------------------------------------------
# Path A: per-layer weight streaming.
#   grid = (batch_tiles, n_layers); batch tiles "parallel", layers "arbitrary"
#   (sequential) with the running activation in a VMEM f32 scratch.
# ---------------------------------------------------------------------------
def _stream_kernel(z_ref, w_ref, b_ref, a_ref, out_ref, acc_ref, *, eq_scale):
    layer = pl.program_id(1)

    @pl.when(layer == 0)
    def _():
        acc_ref[...] = z_ref[...].astype(jnp.float32)

    # EqualizedLinear: y = (x @ W) * c + b   (W stored as [in, out], bf16).
    x = acc_ref[...].astype(w_ref.dtype)
    y = jnp.dot(x, w_ref[0], preferred_element_type=jnp.float32)
    b = b_ref[layer]                         # (1, P) f32 row, resident in VMEM
    y = y * eq_scale + b

    # PReLU with per-channel slope.
    alpha = a_ref[layer]                     # (1, P) f32 row
    acc_ref[...] = jnp.where(y >= 0.0, y, alpha * y)

    @pl.when(layer == pl.num_programs(1) - 1)
    def _():
        out_ref[...] = acc_ref[...].astype(out_ref.dtype)


# ---------------------------------------------------------------------------
# Path B: whole weight stack resident in VMEM (small configs).
#   grid = (batch_tiles,); layers unrolled in-kernel.
# ---------------------------------------------------------------------------
def _resident_kernel(z_ref, w_ref, b_ref, a_ref, out_ref, *, eq_scale, n_layers):
    x = z_ref[...].astype(jnp.float32)
    for l in range(n_layers):                # static unroll over layers
        y = jnp.dot(x.astype(w_ref.dtype), w_ref[l],
                    preferred_element_type=jnp.float32)
        y = y * eq_scale + b_ref[l]          # (1, P) row broadcast
        alpha = a_ref[l]
        x = jnp.where(y >= 0.0, y, alpha * y)
    out_ref[...] = x.astype(out_ref.dtype)


def mapping_network(z, weights_t, biases, alphas, *,
                    weight_dtype=jnp.bfloat16,
                    batch_tile=128,
                    force_stream=None):
    """StyleGAN MappingNetwork forward.

    z:         [batch, planes]
    weights_t: [n_layers, planes, planes], pre-transposed to [in, out] so the
               kernel computes x @ W.
    biases:    [n_layers, planes]
    alphas:    [n_layers, planes]   (nn.PReLU(planes) per-channel slopes)
    """
    batch, planes = z.shape
    n_layers = weights_t.shape[0]
    # EqualizedWeight c = 1/sqrt(prod(shape[1:])) = 1/sqrt(in_planes); computed
    # from the *logical* planes, not the padded width.
    eq_scale = 1.0 / math.sqrt(planes)

    # ---- lane/sublane-dense padding -------------------------------------
    P = _round_up(planes, 128)
    B = _round_up(batch, 8)
    if B > batch_tile:
        B = _round_up(B, batch_tile)
        TB = batch_tile
    else:
        TB = B
    n_bt = B // TB

    zp = _pad_to(z, (B, P), z.dtype)
    wp = _pad_to(weights_t, (n_layers, P, P), weight_dtype)
    bp = _pad_to(biases[:, None, :], (n_layers, 1, P), jnp.float32)
    ap = _pad_to(alphas[:, None, :], (n_layers, 1, P), jnp.float32)

    itemsize_w = jnp.dtype(weight_dtype).itemsize
    w_stack_bytes = n_layers * P * P * itemsize_w
    use_resident = (w_stack_bytes <= 4 * 1024 * 1024) if force_stream is None \
        else (not force_stream)

    z_bytes = jnp.dtype(zp.dtype).itemsize
    if use_resident:
        vmem_est = (w_stack_bytes
                    + 2 * n_layers * P * 4                 # bias + alpha (f32)
                    + 2 * TB * P * (z_bytes + z_bytes))    # z + out (double-buffered)
    else:
        vmem_est = (2 * P * P * itemsize_w                 # double-buffered weight tile
                    + 2 * n_layers * P * 4                 # bias + alpha resident
                    + TB * P * 4                           # f32 accumulator scratch
                    + 2 * TB * P * (z_bytes + z_bytes))    # z + out (double-buffered)
    vmem_limit = int(min(max(1.25 * vmem_est, 32 * 1024 * 1024),
                         64 * 1024 * 1024))

    if use_resident:
        kernel = functools.partial(_resident_kernel, eq_scale=eq_scale,
                                   n_layers=n_layers)
        out_p = pl.pallas_call(
            kernel,
            out_shape=jax.ShapeDtypeStruct((B, P), z.dtype),
            grid_spec=pltpu.PrefetchScalarGridSpec(
                num_scalar_prefetch=0,
                grid=(n_bt,),
                in_specs=[
                    pl.BlockSpec((TB, P), lambda i: (i, 0)),                # z tile
                    pl.BlockSpec((n_layers, P, P), lambda i: (0, 0, 0)),    # W stack (resident)
                    pl.BlockSpec((n_layers, 1, P), lambda i: (0, 0, 0)),    # bias (resident)
                    pl.BlockSpec((n_layers, 1, P), lambda i: (0, 0, 0)),    # alpha (resident)
                ],
                out_specs=pl.BlockSpec((TB, P), lambda i: (i, 0)),
            ),
            compiler_params=pltpu.CompilerParams(
                dimension_semantics=("parallel",),
                vmem_limit_bytes=vmem_limit,
            ),
        )(zp, wp, bp, ap)
    else:
        kernel = functools.partial(_stream_kernel, eq_scale=eq_scale)
        # NOTE: if the weight DMA is still exposed at very large `planes`,
        # pipeline_mode=pl.Buffered(3) on the weight BlockSpec is the next knob
        # (check VMEM budget on v7x before enabling).
        out_p = pl.pallas_call(
            kernel,
            out_shape=jax.ShapeDtypeStruct((B, P), z.dtype),
            grid_spec=pltpu.PrefetchScalarGridSpec(
                num_scalar_prefetch=0,
                grid=(n_bt, n_layers),
                in_specs=[
                    pl.BlockSpec((TB, P), lambda i, l: (i, 0)),               # z tile
                    pl.BlockSpec((1, P, P), lambda i, l: (l, 0, 0)),          # W per layer
                    pl.BlockSpec((n_layers, 1, P), lambda i, l: (0, 0, 0)),   # bias (resident)
                    pl.BlockSpec((n_layers, 1, P), lambda i, l: (0, 0, 0)),   # alpha (resident)
                ],
                out_specs=pl.BlockSpec((TB, P), lambda i, l: (i, 0)),
                scratch_shapes=[pltpu.VMEM((TB, P), jnp.float32)],
            ),
            compiler_params=pltpu.CompilerParams(
                dimension_semantics=("parallel", "arbitrary"),
                vmem_limit_bytes=vmem_limit,
            ),
        )(zp, wp, bp, ap)

    return out_p[:batch, :planes]


def reference(z, weights_t, biases, alphas, weight_dtype=jnp.float32):
    """Pure-JAX reference; weight_dtype=bf16 mimics the kernel's MXU dtype."""
    planes = z.shape[1]
    c = 1.0 / math.sqrt(planes)
    x = z.astype(jnp.float32)
    for l in range(weights_t.shape[0]):
        w = weights_t[l].astype(weight_dtype)
        y = jnp.dot(x.astype(weight_dtype), w,
                    preferred_element_type=jnp.float32) * c
        y = y + biases[l].astype(jnp.float32)
        x = jnp.where(y >= 0.0, y, alphas[l].astype(jnp.float32) * y)
    return x.astype(z.dtype)


if __name__ == "__main__":
    batch = 2
    planes = 32
    n_layers = 4

    key = jax.random.PRNGKey(0)
    kz, kw, kb, ka = jax.random.split(key, 4)

    z = jax.random.normal(kz, (batch, planes), dtype=jnp.float32)
    # EqualizedWeight: weight ~ N(0, 1), shape [out, in]; store transposed [in, out].
    w = jax.random.normal(kw, (n_layers, planes, planes), dtype=jnp.float32)
    weights_t = jnp.transpose(w, (0, 2, 1))
    # EqualizedLinear bias ~ N(0, 1).
    biases = jax.random.normal(kb, (n_layers, planes), dtype=jnp.float32)
    # nn.PReLU(planes): per-channel learnable slope (default init 0.25; jitter to
    # exercise the per-layer / per-channel indexing).
    alphas = 0.25 + 0.05 * jax.random.normal(ka, (n_layers, planes), dtype=jnp.float32)

    ref_bf16 = reference(z, weights_t, biases, alphas, weight_dtype=jnp.bfloat16)
    ref_f32 = reference(z, weights_t, biases, alphas, weight_dtype=jnp.float32)

    # Path B (weights resident, layers unrolled) - default for this small config.
    out_resident = jax.block_until_ready(
        mapping_network(z, weights_t, biases, alphas))
    # Path A (per-layer weight streaming) - forced, to exercise the large-config path.
    out_stream = jax.block_until_ready(
        mapping_network(z, weights_t, biases, alphas, force_stream=True))

    for out in (out_resident, out_stream):
        out_np = np.asarray(out)
        # Tight check vs. a reference that uses the same bf16 weight/activation dtype.
        np.testing.assert_allclose(out_np, np.asarray(ref_bf16), rtol=2e-3, atol=2e-3)
        # Sanity check vs. the exact f32 (PyTorch-semantics) reference.
        np.testing.assert_allclose(out_np, np.asarray(ref_f32), rtol=1e-1, atol=1e-1)

    print("KERNEL_OK")
</pallas_src>

<mosaic_0001>
module attributes {stable_mosaic.version = 11 : i64} {
  func.func @_resident_kernel(%arg0: i32, %arg1: memref<8x128xf32, #tpu.memory_space<vmem>>, %arg2: memref<4x128x128xbf16, #tpu.memory_space<vmem>>, %arg3: memref<4x1x128xf32, #tpu.memory_space<vmem>>, %arg4: memref<4x1x128xf32, #tpu.memory_space<vmem>>, %arg5: memref<8x128xf32, #tpu.memory_space<vmem>>) attributes {dimension_semantics = [#tpu.dimension_semantics<parallel>], iteration_bounds = array<i64: 1>, scalar_prefetch = 0 : i64, scratch_operands = 0 : i64, tpu.core_type = #tpu.core_type<tc>, window_params = [{transform_indices = @transform_0, window_bounds = array<i64: 8, 128>}, {pipeline_mode = #tpu.pipeline_mode<synchronous>, transform_indices = @transform_1, window_bounds = array<i64: 4, 128, 128>}, {pipeline_mode = #tpu.pipeline_mode<synchronous>, transform_indices = @transform_2, window_bounds = array<i64: 4, 1, 128>}, {pipeline_mode = #tpu.pipeline_mode<synchronous>, transform_indices = @transform_3, window_bounds = array<i64: 4, 1, 128>}, {transform_indices = @transform_4, window_bounds = array<i64: 8, 128>}]} {
    %c0 = arith.constant 0 : index
    %c0_0 = arith.constant 0 : index
    %0 = vector.load %arg1[%c0, %c0_0] : memref<8x128xf32, #tpu.memory_space<vmem>>, vector<8x128xf32>
    %1 = arith.truncf %0 : vector<8x128xf32> to vector<8x128xbf16>
    %c0_1 = arith.constant 0 : index
    %c0_2 = arith.constant 0 : index
    %c0_3 = arith.constant 0 : index
    %2 = vector.load %arg2[%c0_1, %c0_2, %c0_3] : memref<4x128x128xbf16, #tpu.memory_space<vmem>>, vector<1x128x128xbf16>
    %3 = vector.shape_cast %2 : vector<1x128x128xbf16> to vector<128x128xbf16>
    %cst = arith.constant dense<0.000000e+00> : vector<8x128xf32>
    %4 = tpu.matmul %1, %3, %cst {dimension_numbers = #tpu.dot_dimension_numbers<[1], [0], [0], [1], [0, 0, 1, 1], [], []>} : vector<8x128xbf16>, vector<128x128xbf16>, vector<8x128xf32> -> vector<8x128xf32>
    %cst_4 = arith.constant 0.176776692 : f32
    %5 = vector.broadcast %cst_4 : f32 to vector<8x128xf32>
    %6 = arith.mulf %4, %5 : vector<8x128xf32>
    %c0_5 = arith.constant 0 : index
    %c0_6 = arith.constant 0 : index
    %c0_7 = arith.constant 0 : index
    %7 = vector.load %arg3[%c0_5, %c0_6, %c0_7] : memref<4x1x128xf32, #tpu.memory_space<vmem>>, vector<1x1x128xf32>
    %8 = vector.shape_cast %7 : vector<1x1x128xf32> to vector<1x128xf32>
    %9 = vector.broadcast %8 : vector<1x128xf32> to vector<8x128xf32>
    %10 = arith.addf %6, %9 : vector<8x128xf32>
    %c0_8 = arith.constant 0 : index
    %c0_9 = arith.constant 0 : index
    %c0_10 = arith.constant 0 : index
    %11 = vector.load %arg4[%c0_8, %c0_9, %c0_10] : memref<4x1x128xf32, #tpu.memory_space<vmem>>, vector<1x1x128xf32>
    %12 = vector.shape_cast %11 : vector<1x1x128xf32> to vector<1x128xf32>
    %cst_11 = arith.constant 0.000000e+00 : f32
    %13 = vector.broadcast %cst_11 : f32 to vector<8x128xf32>
    %14 = arith.cmpf oge, %10, %13 : vector<8x128xf32>
    %15 = vector.broadcast %12 : vector<1x128xf32> to vector<8x128xf32>
    %16 = arith.mulf %15, %10 : vector<8x128xf32>
    %17 = arith.select %14, %10, %16 : vector<8x128xi1>, vector<8x128xf32>
    %18 = arith.truncf %17 : vector<8x128xf32> to vector<8x128xbf16>
    %c1 = arith.constant 1 : index
    %c0_12 = arith.constant 0 : index
    %c0_13 = arith.constant 0 : index
    %19 = vector.load %arg2[%c1, %c0_12, %c0_13] : memref<4x128x128xbf16, #tpu.memory_space<vmem>>, vector<1x128x128xbf16>
    %20 = vector.shape_cast %19 : vector<1x128x128xbf16> to vector<128x128xbf16>
    %cst_14 = arith.constant dense<0.000000e+00> : vector<8x128xf32>
    %21 = tpu.matmul %18, %20, %cst_14 {dimension_numbers = #tpu.dot_dimension_numbers<[1], [0], [0], [1], [0, 0, 1, 1], [], []>} : vector<8x128xbf16>, vector<128x128xbf16>, vector<8x128xf32> -> vector<8x128xf32>
    %cst_15 = arith.constant 0.176776692 : f32
    %22 = vector.broadcast %cst_15 : f32 to vector<8x128xf32>
    %23 = arith.mulf %21, %22 : vector<8x128xf32>
    %c1_16 = arith.constant 1 : index
    %c0_17 = arith.constant 0 : index
    %c0_18 = arith.constant 0 : index
    %24 = vector.load %arg3[%c1_16, %c0_17, %c0_18] : memref<4x1x128xf32, #tpu.memory_space<vmem>>, vector<1x1x128xf32>
    %25 = vector.shape_cast %24 : vector<1x1x128xf32> to vector<1x128xf32>
    %26 = vector.broadcast %25 : vector<1x128xf32> to vector<8x128xf32>
    %27 = arith.addf %23, %26 : vector<8x128xf32>
    %c1_19 = arith.constant 1 : index
    %c0_20 = arith.constant 0 : index
    %c0_21 = arith.constant 0 : index
    %28 = vector.load %arg4[%c1_19, %c0_20, %c0_21] : memref<4x1x128xf32, #tpu.memory_space<vmem>>, vector<1x1x128xf32>
    %29 = vector.shape_cast %28 : vector<1x1x128xf32> to vector<1x128xf32>
    %cst_22 = arith.constant 0.000000e+00 : f32
    %30 = vector.broadcast %cst_22 : f32 to vector<8x128xf32>
    %31 = arith.cmpf oge, %27, %30 : vector<8x128xf32>
    %32 = vector.broadcast %29 : vector<1x128xf32> to vector<8x128xf32>
    %33 = arith.mulf %32, %27 : vector<8x128xf32>
    %34 = arith.select %31, %27, %33 : vector<8x128xi1>, vector<8x128xf32>
    %35 = arith.truncf %34 : vector<8x128xf32> to vector<8x128xbf16>
    %c2 = arith.constant 2 : index
    %c0_23 = arith.constant 0 : index
    %c0_24 = arith.constant 0 : index
    %36 = vector.load %arg2[%c2, %c0_23, %c0_24] : memref<4x128x128xbf16, #tpu.memory_space<vmem>>, vector<1x128x128xbf16>
    %37 = vector.shape_cast %36 : vector<1x128x128xbf16> to vector<128x128xbf16>
    %cst_25 = arith.constant dense<0.000000e+00> : vector<8x128xf32>
    %38 = tpu.matmul %35, %37, %cst_25 {dimension_numbers = #tpu.dot_dimension_numbers<[1], [0], [0], [1], [0, 0, 1, 1], [], []>} : vector<8x128xbf16>, vector<128x128xbf16>, vector<8x128xf32> -> vector<8x128xf32>
    %cst_26 = arith.constant 0.176776692 : f32
    %39 = vector.broadcast %cst_26 : f32 to vector<8x128xf32>
    %40 = arith.mulf %38, %39 : vector<8x128xf32>
    %c2_27 = arith.constant 2 : index
    %c0_28 = arith.constant 0 : index
    %c0_29 = arith.constant 0 : index
    %41 = vector.load %arg3[%c2_27, %c0_28, %c0_29] : memref<4x1x128xf32, #tpu.memory_space<vmem>>, vector<1x1x128xf32>
    %42 = vector.shape_cast %41 : vector<1x1x128xf32> to vector<1x128xf32>
    %43 = vector.broadcast %42 : vector<1x128xf32> to vector<8x128xf32>
    %44 = arith.addf %40, %43 : vector<8x128xf32>
    %c2_30 = arith.constant 2 : index
    %c0_31 = arith.constant 0 : index
    %c0_32 = arith.constant 0 : index
    %45 = vector.load %arg4[%c2_30, %c0_31, %c0_32] : memref<4x1x128xf32, #tpu.memory_space<vmem>>, vector<1x1x128xf32>
    %46 = vector.shape_cast %45 : vector<1x1x128xf32> to vector<1x128xf32>
    %cst_33 = arith.constant 0.000000e+00 : f32
    %47 = vector.broadcast %cst_33 : f32 to vector<8x128xf32>
    %48 = arith.cmpf oge, %44, %47 : vector<8x128xf32>
    %49 = vector.broadcast %46 : vector<1x128xf32> to vector<8x128xf32>
    %50 = arith.mulf %49, %44 : vector<8x128xf32>
    %51 = arith.select %48, %44, %50 : vector<8x128xi1>, vector<8x128xf32>
    %52 = arith.truncf %51 : vector<8x128xf32> to vector<8x128xbf16>
    %c3 = arith.constant 3 : index
    %c0_34 = arith.constant 0 : index
    %c0_35 = arith.constant 0 : index
    %53 = vector.load %arg2[%c3, %c0_34, %c0_35] : memref<4x128x128xbf16, #tpu.memory_space<vmem>>, vector<1x128x128xbf16>
    %54 = vector.shape_cast %53 : vector<1x128x128xbf16> to vector<128x128xbf16>
    %cst_36 = arith.constant dense<0.000000e+00> : vector<8x128xf32>
    %55 = tpu.matmul %52, %54, %cst_36 {dimension_numbers = #tpu.dot_dimension_numbers<[1], [0], [0], [1], [0, 0, 1, 1], [], []>} : vector<8x128xbf16>, vector<128x128xbf16>, vector<8x128xf32> -> vector<8x128xf32>
    %cst_37 = arith.constant 0.176776692 : f32
    %56 = vector.broadcast %cst_37 : f32 to vector<8x128xf32>
    %57 = arith.mulf %55, %56 : vector<8x128xf32>
    %c3_38 = arith.constant 3 : index
    %c0_39 = arith.constant 0 : index
    %c0_40 = arith.constant 0 : index
    %58 = vector.load %arg3[%c3_38, %c0_39, %c0_40] : memref<4x1x128xf32, #tpu.memory_space<vmem>>, vector<1x1x128xf32>
    %59 = vector.shape_cast %58 : vector<1x1x128xf32> to vector<1x128xf32>
    %60 = vector.broadcast %59 : vector<1x128xf32> to vector<8x128xf32>
    %61 = arith.addf %57, %60 : vector<8x128xf32>
    %c3_41 = arith.constant 3 : index
    %c0_42 = arith.constant 0 : index
    %c0_43 = arith.constant 0 : index
    %62 = vector.load %arg4[%c3_41, %c0_42, %c0_43] : memref<4x1x128xf32, #tpu.memory_space<vmem>>, vector<1x1x128xf32>
    %63 = vector.shape_cast %62 : vector<1x1x128xf32> to vector<1x128xf32>
    %cst_44 = arith.constant 0.000000e+00 : f32
    %64 = vector.broadcast %cst_44 : f32 to vector<8x128xf32>
    %65 = arith.cmpf oge, %61, %64 : vector<8x128xf32>
    %66 = vector.broadcast %63 : vector<1x128xf32> to vector<8x128xf32>
    %67 = arith.mulf %66, %61 : vector<8x128xf32>
    %68 = arith.select %65, %61, %67 : vector<8x128xi1>, vector<8x128xf32>
    %c0_45 = arith.constant 0 : index
    %c0_46 = arith.constant 0 : index
    %69 = vector.load %arg5[%c0_45, %c0_46] : memref<8x128xf32, #tpu.memory_space<vmem>>, vector<8x128xf32>
    tpu.vector_store %arg5[%c0_45, %c0_46], %68 {strides = array<i32>} : memref<8x128xf32, #tpu.memory_space<vmem>>, vector<8x128xf32>,
    return
  }
  func.func @transform_0(%arg0: i32) -> (i32, i32) {
    %c0_i32 = arith.constant 0 : i32
    %c0_i32_0 = arith.constant 0 : i32
    return %arg0, %c0_i32 : i32, i32
  }
  func.func @transform_1(%arg0: i32) -> (i32, i32, i32) {
    %c0_i32 = arith.constant 0 : i32
    %c0_i32_0 = arith.constant 0 : i32
    %c0_i32_1 = arith.constant 0 : i32
    %c0_i32_2 = arith.constant 0 : i32
    return %c0_i32, %c0_i32_0, %c0_i32_1 : i32, i32, i32
  }
  func.func @transform_2(%arg0: i32) -> (i32, i32, i32) {
    %c0_i32 = arith.constant 0 : i32
    %c0_i32_0 = arith.constant 0 : i32
    %c0_i32_1 = arith.constant 0 : i32
    %c0_i32_2 = arith.constant 0 : i32
    return %c0_i32, %c0_i32_0, %c0_i32_1 : i32, i32, i32
  }
  func.func @transform_3(%arg0: i32) -> (i32, i32, i32) {
    %c0_i32 = arith.constant 0 : i32
    %c0_i32_0 = arith.constant 0 : i32
    %c0_i32_1 = arith.constant 0 : i32
    %c0_i32_2 = arith.constant 0 : i32
    return %c0_i32, %c0_i32_0, %c0_i32_1 : i32, i32, i32
  }
  func.func @transform_4(%arg0: i32) -> (i32, i32) {
    %c0_i32 = arith.constant 0 : i32
    %c0_i32_0 = arith.constant 0 : i32
    return %arg0, %c0_i32 : i32, i32
  }
}

</mosaic_0001>

<bundles_post_ra>
// kernel: tpu_custom_call.1
= control target key start
LH: loop header
LB: loop body
LE: loop exit
PB: predicated region body
PF: predicated region fallthrough
CT: control target
= control target key end

     0   :  { %9 = vsyncpa [#allocation3], 0  ;;  %s967_s0 = inlined_call_operand.hbm [shape: f32[8,128], index: 0, kind: input, shape index: {}]   ;;  %s968_s1 = inlined_call_operand.hbm [shape: bf16[4,128,128], index: 1, kind: input, shape index: {}]   ;;  %s969_s2 = inlined_call_operand.hbm [shape: f32[4,1,128], index: 2, kind: input, shape index: {}]   ;;  %s970_s3 = inlined_call_operand.vmem [shape: f32[4,1,128], index: 3, kind: input, shape index: {}]   ;;  %s971_s4 = inlined_call_operand.hbm [shape: f32[8,128], index: 4, kind: output, shape index: {}]  }
   0x1   :  { %10 = vsyncpa [#allocation6], 0 }
   0x2   :  { %11 = vsyncpa [#allocation4], 0  ;;  %s868_s15 = smov [#allocation5]  }
   0x3   :  { %s27_s16 = sshll.u32 %s868_s15, 4  ;;  %s28_s16 = int_to_ptr.vmem [resolvable:$true] %s27_s16 }
   0x4   :  { %s790_s17 = scalar_lea.vmem %s28_s16, 4096  ;;  %p795_p1 = scmp.lt.s32.totalorder %s28_s16, %s28_s16 }
   0x5   :  { %p791_p0 = scmp.ne.s32.totalorder %s28_s16, %s790_s17  ;;  %p796_p2 = scmp.lt.s32.totalorder %s790_s17, %s790_s17 }
   0x7   :  { %p797_p3 = por %p796_p2, %p795_p1 }
   0x9   :  { %p798_p4 = pnand %p797_p3, %p791_p0 }
   0xb   :  { %801 = shalt.err (!%p798_p4)
}
   0xc   :  { %s869_s18 = smov 64   ;;  %s870_s19 = smov 4  }
   0xd   :  { %33 = dma.hbm_to_vmem [thread:$0]  %s968_s1, 4096, %s28_s16, [#allocation6], %s869_s18, %s869_s18, %s870_s19  }
   0xe   :  { %s871_s22 = smov [#allocation2]   ;;  %s872_s24 = smov [#allocation7]  }
   0xf   :  { %s18_s23 = sshll.u32 %s871_s22, 4  ;;  %s39_s25 = sshll.u32 %s872_s24, 4  ;;  %s19_s23 = int_to_ptr.vmem [resolvable:$true] %s18_s23  ;;  %s40_s25 = int_to_ptr.vmem [resolvable:$true] %s39_s25 }
  0x10   :  { %s810_s26 = scalar_lea.vmem %s19_s23, 128  ;;  %p815_p6 = scmp.lt.s32.totalorder %s19_s23, %s19_s23 }
  0x11   :  { %p811_p5 = scmp.ne.s32.totalorder %s19_s23, %s810_s26  ;;  %p816_p7 = scmp.lt.s32.totalorder %s810_s26, %s810_s26 }
  0x13   :  { %p817_p8 = por %p816_p7, %p815_p6 }
  0x15   :  { %p818_p9 = pnand %p817_p8, %p811_p5 }
  0x17   :  { %821 = shalt.err (!%p818_p9)
}
  0x18   :  { %21 = dma.hbm_to_vmem [thread:$0]  %s967_s0, 128, %s19_s23, [#allocation3]  }
  0x19   :  { %s830_s29 = scalar_lea.vmem %s40_s25, 64  ;;  %p835_p11 = scmp.lt.s32.totalorder %s40_s25, %s40_s25 }
  0x1a   :  { %p831_p10 = scmp.ne.s32.totalorder %s40_s25, %s830_s29  ;;  %p836_p12 = scmp.lt.s32.totalorder %s830_s29, %s830_s29 }
  0x1c   :  { %p837_p13 = por %p836_p12, %p835_p11 }
  0x1e   :  { %p838_p0 = pnand %p837_p13, %p831_p10 }
  0x20   :  { %841 = shalt.err (!%p838_p0)
}
  0x21   :  { %s873_s1 = smov 16   ;;  %s874_s30 = smov 1  }
  0x22   :  { %45 = dma.hbm_to_vmem [thread:$0]  %s969_s2, 64, %s40_s25, [#allocation6], %s873_s1, %s873_s1, %s874_s30  }
  0x23   :  { %862 = dma.done.wait [#allocation3], 128  }
  0x24   :  { %863 = vsyncadd [#allocation3], 4294967168 }
  0x25   :  { %864 = dma.done.wait [#allocation6], 4160  }
  0x26   :  { %865 = vsyncadd [#allocation6], 4294963136  ;;  %v875_v0 = vmov 0.0   ;;  %vm876_vm0 = vmmov 0   ;;  %v750_v1 = vld [vmem:[#allocation5 + $0x38] sm:$0xff]   ;;  %v751_v2 = vld [vmem:[#allocation5 + $0x30] sm:$0xff]  }
  0x27   :  { %660 = vmatprep.subr.bf16.mxu0 %v875_v0  ;;  %676 = vmatprep.mubr.msk.bf16.mxu0 %vm876_vm0, %v875_v0  ;;  %v752_v3 = vld [vmem:[#allocation5 + $0x28] sm:$0xff]   ;;  %v758_v4 = vld [vmem:[#allocation5 + $0x78] sm:$0xff]   ;;  %v753_v5 = vld [vmem:[#allocation5 + $0x20] sm:$0xff]   ;;  %s877_s13 = smov [#allocation8]  }
  0x28   :  { %680 = vmatprep.subr.bf16.mxu1 %v875_v0  ;;  %696 = vmatprep.mubr.msk.bf16.mxu1 %vm876_vm0, %v875_v0  ;;  %v759_v6 = vld [vmem:[#allocation5 + $0x70] sm:$0xff]   ;;  %v754_v7 = vld [vmem:[#allocation5 + $0x18] sm:$0xff]   ;;  %v760_v8 = vld [vmem:[#allocation5 + $0x68] sm:$0xff]   ;;  %s571_s14 = sshll.u32 %s877_s13, 4  ;;  %s572_s14 = int_to_ptr.vmem [resolvable:$true] %s571_s14 }
  0x29   :  { %661 = vmatpush3.bf16.msra.mxu0 %v750_v1  ;;  %681 = vmatpush3.bf16.msra.mxu1 %v758_v4  ;;  %v755_v9 = vld [vmem:[#allocation5 + $0x10] sm:$0xff]   ;;  %v761_v10 = vld [vmem:[#allocation5 + $0x60] sm:$0xff]   ;;  %v756_v11 = vld [vmem:[#allocation5 + $0x8] sm:$0xff]   ;;  %s842_s15 = scalar_lea.vmem %s572_s14, 128  ;;  %p847_p2 = scmp.lt.s32.totalorder %s572_s14, %s572_s14 }
  0x2a   :  { %662 = vmatprep.subr.bf16.mxu0 %v875_v0  ;;  %682 = vmatprep.subr.bf16.mxu1 %v875_v0  ;;  %v762_v12 = vld [vmem:[#allocation5 + $0x58] sm:$0xff]   ;;  %v757_v13 = vld [vmem:[#allocation5] sm:$0xff]   ;;  %v763_v15 = vld [vmem:[#allocation5 + $0x50] sm:$0xff]   ;;  %p843_p1 = scmp.ne.s32.totalorder %s572_s14, %s842_s15  ;;  %p848_p3 = scmp.lt.s32.totalorder %s842_s15, %s842_s15 }
  0x2b   :  { %v58_v14 = vld [vmem:[#allocation2] sm:$0xff]  ;;  %v764_v17 = vld [vmem:[#allocation5 + $0x48] sm:$0xff]   ;;  %v765_v18 = vld [vmem:[#allocation5 + $0x40] sm:$0xff]  }
  0x2c   :  { %v59_v16 = vpack.c.bf16 %v58_v14, %v58_v14  ;;  %v766_v19 = vld [vmem:[#allocation5 + $0xb8] sm:$0xff]   ;;  %v767_v20 = vld [vmem:[#allocation5 + $0xb0] sm:$0xff]   ;;  %v768_v21 = vld [vmem:[#allocation5 + $0xa8] sm:$0xff]   ;;  %p849_p4 = por %p848_p3, %p847_p2 }
  0x2d   :  { %663 = vmatpush3.bf16.msra.mxu0 %v751_v2  ;;  %683 = vmatpush3.bf16.msra.mxu1 %v759_v6  ;;  %v769_v22 = vld [vmem:[#allocation5 + $0xa0] sm:$0xff]   ;;  %v770_v23 = vld [vmem:[#allocation5 + $0x98] sm:$0xff]   ;;  %v771_v24 = vld [vmem:[#allocation5 + $0x90] sm:$0xff]  }
  0x2e   :  { %664 = vmatprep.subr.bf16.mxu0 %v875_v0  ;;  %684 = vmatprep.subr.bf16.mxu1 %v875_v0  ;;  %v589_v26 = vld [vmem:[#allocation7] ss:$0 sm:$0xff]  ;;  %v590_v28 = vld [vmem:[%s970_s3] ss:$0 sm:$0xff]  ;;  %v772_v36 = vld [vmem:[#allocation5 + $0x88] sm:$0xff]   ;;  %p850_p5 = pnand %p849_p4, %p843_p1 }
  0x2f   :  { %v773_v37 = vld [vmem:[#allocation5 + $0x80] sm:$0xff]   ;;  %v774_v38 = vld [vmem:[#allocation5 + $0xf8] sm:$0xff]   ;;  %v775_v39 = vld [vmem:[#allocation5 + $0xf0] sm:$0xff]  }
  0x30   :  { %v776_v40 = vld [vmem:[#allocation5 + $0xe8] sm:$0xff]   ;;  %v777_v41 = vld [vmem:[#allocation5 + $0xe0] sm:$0xff]   ;;  %v778_v42 = vld [vmem:[#allocation5 + $0xd8] sm:$0xff]  }
  0x31   :  { %665 = vmatpush3.bf16.msra.mxu0 %v752_v3  ;;  %685 = vmatpush3.bf16.msra.mxu1 %v760_v8  ;;  %v779_v43 = vld [vmem:[#allocation5 + $0xd0] sm:$0xff]   ;;  %v599_v45 = vld [vmem:[#allocation7 + $0x1] ss:$0 sm:$0xff]  ;;  %v601_v47 = vld [vmem:[%s970_s3 + $0x1] ss:$0 sm:$0xff] }
  0x32   :  { %666 = vmatprep.subr.bf16.mxu0 %v875_v0  ;;  %686 = vmatprep.subr.bf16.mxu1 %v875_v0  ;;  %v780_v55 = vld [vmem:[#allocation5 + $0xc8] sm:$0xff]   ;;  %v781_v56 = vld [vmem:[#allocation5 + $0xc0] sm:$0xff]   ;;  %v612_v60 = vld [vmem:[%s970_s3 + $0x2] ss:$0 sm:$0xff] }
  0x33   :  { %v610_v58 = vld [vmem:[#allocation7 + $0x2] ss:$0 sm:$0xff] }
  0x35   :  { %667 = vmatpush3.bf16.msra.mxu0 %v753_v5  ;;  %687 = vmatpush3.bf16.msra.mxu1 %v761_v10 }
  0x36   :  { %668 = vmatprep.subr.bf16.mxu0 %v875_v0  ;;  %688 = vmatprep.subr.bf16.mxu1 %v875_v0 }
  0x39   :  { %669 = vmatpush3.bf16.msra.mxu0 %v754_v7  ;;  %689 = vmatpush3.bf16.msra.mxu1 %v762_v12  ;;  %v623_v7 = vld [vmem:[%s970_s3 + $0x3] ss:$0 sm:$0xff] }
  0x3a   :  { %670 = vmatprep.subr.bf16.mxu0 %v875_v0  ;;  %690 = vmatprep.subr.bf16.mxu1 %v875_v0 }
  0x3d   :  { %671 = vmatpush3.bf16.msra.mxu0 %v755_v9  ;;  %691 = vmatpush3.bf16.msra.mxu1 %v763_v15 }
  0x3e   :  { %672 = vmatprep.subr.bf16.mxu0 %v875_v0  ;;  %692 = vmatprep.subr.bf16.mxu1 %v875_v0 }
  0x41   :  { %673 = vmatpush3.bf16.msra.mxu0 %v756_v11  ;;  %693 = vmatpush3.bf16.msra.mxu1 %v764_v17 }
  0x42   :  { %674 = vmatprep.subr.bf16.mxu0 %v875_v0  ;;  %694 = vmatprep.subr.bf16.mxu1 %v875_v0 }
  0x45   :  { %675 = vmatpush3.bf16.msra.mxu0 %v757_v13  ;;  %695 = vmatpush3.bf16.msra.mxu1 %v765_v18 }
  0x46   :  { %700 = vmatprep.subr.bf16.mxu0 %v875_v0  ;;  %720 = vmatprep.subr.bf16.mxu1 %v875_v0 }
  0x48   :  { %677 = vmatmul.mubr.bf16.vlgmr.msra.gmra.mxu0 %v59_v16 }
  0x49   :  { %716 = vmatprep.mubr.msk.bf16.mxu0 %vm876_vm0, %v875_v0  ;;  %701 = vmatpush3.bf16.msra.mxu0 %v766_v19 }
  0x4a   :  { %702 = vmatprep.subr.bf16.mxu0 %v875_v0 }
  0x4d   :  { %703 = vmatpush3.bf16.msra.mxu0 %v767_v20 }
  0x4e   :  { %704 = vmatprep.subr.bf16.mxu0 %v875_v0 }
  0x51   :  { %705 = vmatpush3.bf16.msra.mxu0 %v768_v21 }
  0x52   :  { %706 = vmatprep.subr.bf16.mxu0 %v875_v0 }
  0x55   :  { %707 = vmatpush3.bf16.msra.mxu0 %v769_v22 }
  0x56   :  { %708 = vmatprep.subr.bf16.mxu0 %v875_v0 }
  0x59   :  { %709 = vmatpush3.bf16.msra.mxu0 %v770_v23 }
  0x5a   :  { %710 = vmatprep.subr.bf16.mxu0 %v875_v0 }
  0x5d   :  { %711 = vmatpush3.bf16.msra.mxu0 %v771_v24 }
  0x5e   :  { %712 = vmatprep.subr.bf16.mxu0 %v875_v0 }
  0x61   :  { %713 = vmatpush3.bf16.msra.mxu0 %v772_v36 }
  0x62   :  { %714 = vmatprep.subr.bf16.mxu0 %v875_v0 }
  0x65   :  { %715 = vmatpush3.bf16.msra.mxu0 %v773_v37 }
 0x108   :  { %v158_v25 = vpop.f32.mrf.mxu0 }
 0x109   :  { %v164_v27 = vmul.f32 0.17677669, %v158_v25 }
 0x10a   :  { %v678_v29 = vpop.f32.mrf.mxu0 }
 0x10b   :  { %v172_v30 = vadd.f32 %v589_v26, %v164_v27 }
 0x10c   :  { %v161_v31 = vpop.f32.mrf.mxu0 }
 0x10d   :  { %v181_v32 = vmul.f32 %v590_v28, %v172_v30  ;;  %vm174_vm1 = vcmp.ge.f32.partialorder %v172_v30, 0.0 }
 0x10e   :  { %v679_v33 = vpop.f32.mrf.mxu0 }
 0x10f   :  { %v182_v34 = vsel %vm174_vm1, %v172_v30, %v181_v32 }
 0x110   :  { %v183_v35 = vpack.c.bf16 %v182_v34, %v182_v34 }
 0x112   :  { %697 = vmatmul.mubr.bf16.vlgmr.msra.gmra.mxu1 %v183_v35 }
 0x113   :  { %736 = vmatprep.mubr.msk.bf16.mxu1 %vm876_vm0, %v875_v0  ;;  %721 = vmatpush3.bf16.msra.mxu1 %v774_v38 }
 0x114   :  { %722 = vmatprep.subr.bf16.mxu1 %v875_v0 }
 0x117   :  { %723 = vmatpush3.bf16.msra.mxu1 %v775_v39 }
 0x118   :  { %724 = vmatprep.subr.bf16.mxu1 %v875_v0 }
 0x11b   :  { %725 = vmatpush3.bf16.msra.mxu1 %v776_v40 }
 0x11c   :  { %726 = vmatprep.subr.bf16.mxu1 %v875_v0 }
 0x11f   :  { %727 = vmatpush3.bf16.msra.mxu1 %v777_v41 }
 0x120   :  { %728 = vmatprep.subr.bf16.mxu1 %v875_v0 }
 0x123   :  { %729 = vmatpush3.bf16.msra.mxu1 %v778_v42 }
 0x124   :  { %730 = vmatprep.subr.bf16.mxu1 %v875_v0 }
 0x127   :  { %731 = vmatpush3.bf16.msra.mxu1 %v779_v43 }
 0x128   :  { %732 = vmatprep.subr.bf16.mxu1 %v875_v0 }
 0x12b   :  { %733 = vmatpush3.bf16.msra.mxu1 %v780_v55 }
 0x12c   :  { %734 = vmatprep.subr.bf16.mxu1 %v875_v0  ;;  %v621_v0 = vld [vmem:[#allocation7 + $0x3] ss:$0 sm:$0xff] }
 0x12f   :  { %735 = vmatpush3.bf16.msra.mxu1 %v781_v56 }
 0x1d2   :  { %v283_v44 = vpop.f32.mrf.mxu1 }
 0x1d3   :  { %v289_v46 = vmul.f32 0.17677669, %v283_v44 }
 0x1d4   :  { %v698_v48 = vpop.f32.mrf.mxu1 }
 0x1d5   :  { %v298_v49 = vadd.f32 %v599_v45, %v289_v46 }
 0x1d6   :  { %v286_v50 = vpop.f32.mrf.mxu1 }
 0x1d7   :  { %vm301_vm2 = vcmp.ge.f32.partialorder %v298_v49, 0.0  ;;  %v308_v51 = vmul.f32 %v601_v47, %v298_v49 }
 0x1d8   :  { %v699_v52 = vpop.f32.mrf.mxu1 }
 0x1d9   :  { %v309_v53 = vsel %vm301_vm2, %v298_v49, %v308_v51 }
 0x1da   :  { %v310_v54 = vpack.c.bf16 %v309_v53, %v309_v53 }
 0x1dc   :  { %717 = vmatmul.mubr.bf16.vlgmr.msra.gmra.mxu0 %v310_v54 }
 0x29c   :  { %v410_v57 = vpop.f32.mrf.mxu0 }
 0x29d   :  { %v416_v59 = vmul.f32 0.17677669, %v410_v57 }
 0x29e   :  { %v718_v61 = vpop.f32.mrf.mxu0 }
 0x29f   :  { %v425_v62 = vadd.f32 %v610_v58, %v416_v59 }
 0x2a0   :  { %v413_v63 = vpop.f32.mrf.mxu0 }
 0x2a1   :  { %vm428_vm3 = vcmp.ge.f32.partialorder %v425_v62, 0.0  ;;  %v435_v1 = vmul.f32 %v612_v60, %v425_v62 }
 0x2a2   :  { %v719_v2 = vpop.f32.mrf.mxu0 }
 0x2a3   :  { %v436_v3 = vsel %vm428_vm3, %v425_v62, %v435_v1 }
 0x2a4   :  { %v437_v4 = vpack.c.bf16 %v436_v3, %v436_v3 }
 0x2a6   :  { %737 = vmatmul.mubr.bf16.vlgmr.msra.gmra.mxu1 %v437_v4 }
 0x366   :  { %v537_v5 = vpop.f32.mrf.mxu1 }
 0x367   :  { %v543_v6 = vmul.f32 0.17677669, %v537_v5 }
 0x368   :  { %v738_v8 = vpop.f32.mrf.mxu1 }
 0x369   :  { %v552_v9 = vadd.f32 %v621_v0, %v543_v6 }
 0x36a   :  { %v540_v10 = vpop.f32.mrf.mxu1 }
 0x36b   :  { %v562_v11 = vmul.f32 %v623_v7, %v552_v9  ;;  %vm555_vm4 = vcmp.ge.f32.partialorder %v552_v9, 0.0 }
 0x36c   :  { %v739_v12 = vpop.f32.mrf.mxu1 }
 0x36d   :  { %v563_v13 = vsel %vm555_vm4, %v552_v9, %v562_v11 }
 0x36e   :  { %564 = vst [vmem:[#allocation8] sm:$0xff] %v563_v13 }
 0x36f   :  { %853 = shalt.err (!%p850_p5)
}
 0x370   :  { %574 = dma.vmem_to_hbm [thread:$0]  %s572_s14, 128, %s971_s4, [#allocation4]  }
 0x371   :  { %866 = dma.done.wait [#allocation4], 128  }
 0x372   :  { %867 = vsyncadd [#allocation4], 4294967168 }
 0x373   :  { %578 = vsyncpa [#allocation3], 1 }
 0x374   :  { %579 = vsyncpa [#allocation6], 1 }
 0x375   :  { %580 = vsyncpa [#allocation4], 1 }

</bundles_post_ra>
